<compile_context>
chip_gen: v6e
topology: v6e:2x2x1
jax: 0.10.0
libtpu: 0.0.40
codegen_flags: <defaults>
</compile_context>

<pallas_src>
import functools

import jax
import jax.numpy as jnp
from jax import lax
from jax.experimental import pallas as pl
from jax.experimental.pallas import tpu as pltpu


def lstm_kernel(x_ref, wih_ref, whh_ref, b_ref, out_ref, h_ref, c_ref,
                *, t_chunk, batch, hidden):
    """One T-chunk of the LSTM recurrence.

    x_ref:   (t_chunk*B, I)   time-major input rows for this chunk
    wih_ref: (I, 4H)          input->gates weights (pre-transposed)
    whh_ref: (H, 4H)          hidden->gates weights (pre-transposed)
    b_ref:   (1, 4H)          b_ih + b_hh (float32)
    out_ref: (t_chunk*B, H)   hidden states for this chunk
    h_ref, c_ref: (B, H) f32  VMEM scratch carrying state across grid steps
    """
    H = hidden
    B = batch

    # Zero the carried state on the first chunk only.
    @pl.when(pl.program_id(0) == 0)
    def _():
        h_ref[...] = jnp.zeros_like(h_ref)
        c_ref[...] = jnp.zeros_like(c_ref)

    wih = wih_ref[...]                       # (I, 4H)
    whh = whh_ref[...]                       # (H, 4H)
    bias = b_ref[...]                        # (1, 4H) f32
    cdt = wih.dtype                          # matmul operand dtype (f32 or bf16)

    # Hoisted input projection + bias for the whole chunk: one batched matmul,
    # off the serial critical path.  (t_chunk*B, 4H), f32 accumulation.
    preact = jnp.dot(x_ref[...].astype(cdt), wih,
                     preferred_element_type=jnp.float32) + bias

    # Full-vreg-width activation blend: lanes [2H, 3H) (the "g" gate) use tanh,
    # all other lanes use sigmoid.  Mask built once, outside the unrolled loop.
    lane = lax.broadcasted_iota(jnp.int32, (B, 4 * H), 1)
    g_lane = (lane >= 2 * H) & (lane < 3 * H)

    h = h_ref[...]                           # (B, H) f32
    c = c_ref[...]                           # (B, H) f32

    # Fully unrolled serial recurrence (t_chunk is a small static int).
    for s in range(t_chunk):
        gates = preact[s * B:(s + 1) * B, :] + jnp.dot(
            h.astype(cdt), whh, preferred_element_type=jnp.float32)  # (B, 4H)
        act = jnp.where(g_lane, jnp.tanh(gates), jax.nn.sigmoid(gates))
        i_g = act[:, 0 * H:1 * H]
        f_g = act[:, 1 * H:2 * H]
        g_g = act[:, 2 * H:3 * H]
        o_g = act[:, 3 * H:4 * H]
        c = f_g * c + i_g * g_g
        h = o_g * jnp.tanh(c)
        out_ref[s * B:(s + 1) * B, :] = h

    h_ref[...] = h
    c_ref[...] = c


def lstm_forward(x, w_ih, w_hh, b_ih, b_hh, *, t_chunk=None,
                 param_dtype=jnp.float32):
    """x: (B, T, I) float32.  Returns (B, T, H) — same as `out` of nn.LSTM."""
    B, T, I = x.shape
    H = w_hh.shape[1]
    assert w_ih.shape == (4 * H, I) and w_hh.shape == (4 * H, H)

    if t_chunk is None:
        t_chunk = T
    B_pad = ((B + 7) // 8) * 8                       # sublane alignment
    T_pad = ((T + t_chunk - 1) // t_chunk) * t_chunk
    n_chunks = T_pad // t_chunk

    # Time-major, batch padded, flattened to 2-D (T_pad*B_pad, I).
    x_tm = jnp.transpose(x.astype(jnp.float32), (1, 0, 2))          # (T, B, I)
    x_tm = jnp.pad(x_tm, ((0, T_pad - T), (0, B_pad - B), (0, 0)))
    x_2d = x_tm.reshape(T_pad * B_pad, I)

    wih_t = jnp.transpose(w_ih, (1, 0)).astype(param_dtype)         # (I, 4H)
    whh_t = jnp.transpose(w_hh, (1, 0)).astype(param_dtype)         # (H, 4H)
    bias = (b_ih + b_hh).reshape(1, 4 * H).astype(jnp.float32)      # (1, 4H)

    cost = pl.CostEstimate(
        flops=2 * T_pad * B_pad * 4 * H * (I + H),
        transcendentals=T_pad * B_pad * (2 * 4 * H + H),
        bytes_accessed=4 * (x_2d.size + T_pad * B_pad * H
                            + wih_t.size + whh_t.size + bias.size),
    )

    kernel = functools.partial(lstm_kernel, t_chunk=t_chunk,
                               batch=B_pad, hidden=H)

    out_2d = pl.pallas_call(
        kernel,
        out_shape=jax.ShapeDtypeStruct((T_pad * B_pad, H), jnp.float32),
        grid=(n_chunks,),
        in_specs=[
            pl.BlockSpec((t_chunk * B_pad, I), lambda t: (t, 0)),   # x chunk
            pl.BlockSpec((I, 4 * H), lambda t: (0, 0)),             # W_ih^T
            pl.BlockSpec((H, 4 * H), lambda t: (0, 0)),             # W_hh^T
            pl.BlockSpec((1, 4 * H), lambda t: (0, 0)),             # bias
        ],
        out_specs=pl.BlockSpec((t_chunk * B_pad, H), lambda t: (t, 0)),
        scratch_shapes=[
            pltpu.VMEM((B_pad, H), jnp.float32),   # h carry
            pltpu.VMEM((B_pad, H), jnp.float32),   # c carry
        ],
        compiler_params=pltpu.CompilerParams(
            dimension_semantics=("arbitrary",)),   # serial carry over T-chunks
        cost_estimate=cost,
    )(x_2d, wih_t, whh_t, bias)

    out = out_2d.reshape(T_pad, B_pad, H)[:T, :B, :]                # (T, B, H)
    return jnp.transpose(out, (1, 0, 2))                            # (B, T, H)


def lstm_reference(x, w_ih, w_hh, b_ih, b_hh):
    """Pure-JAX reference matching torch.nn.LSTM (batch_first) semantics."""
    B, T, I = x.shape
    H = w_hh.shape[1]
    bias = b_ih + b_hh

    def step(carry, x_t):
        h, c = carry
        gates = x_t @ w_ih.T + h @ w_hh.T + bias
        i_g = jax.nn.sigmoid(gates[:, 0:H])
        f_g = jax.nn.sigmoid(gates[:, H:2 * H])
        g_g = jnp.tanh(gates[:, 2 * H:3 * H])
        o_g = jax.nn.sigmoid(gates[:, 3 * H:4 * H])
        c_new = f_g * c + i_g * g_g
        h_new = o_g * jnp.tanh(c_new)
        return (h_new, c_new), h_new

    h0 = jnp.zeros((B, H), jnp.float32)
    c0 = jnp.zeros((B, H), jnp.float32)
    (_, _), hs = lax.scan(step, (h0, c0), jnp.transpose(x, (1, 0, 2)))
    return jnp.transpose(hs, (1, 0, 2))


if __name__ == "__main__":
    # Input from the original script: x_data is (6, 6, 1) -> input_size = 1.
    x_data = [
        [[0], [1], [1], [0], [0], [0]],
        [[0], [0], [0], [2], [2], [0]],
        [[0], [0], [0], [0], [3], [3]],
        [[0], [2], [2], [0], [0], [0]],
        [[0], [0], [3], [3], [0], [0]],
        [[0], [0], [0], [0], [1], [1]],
    ]
    x = jnp.asarray(x_data, dtype=jnp.float32)      # (B=6, T=6, I=1)

    input_size = 1
    hidden_size = 32

    # Deterministic parameter init, matching PyTorch's U(-1/sqrt(H), 1/sqrt(H)).
    key = jax.random.PRNGKey(0)
    k1, k2, k3, k4 = jax.random.split(key, 4)
    bound = 1.0 / (hidden_size ** 0.5)
    w_ih = jax.random.uniform(k1, (4 * hidden_size, input_size),
                              minval=-bound, maxval=bound, dtype=jnp.float32)
    w_hh = jax.random.uniform(k2, (4 * hidden_size, hidden_size),
                              minval=-bound, maxval=bound, dtype=jnp.float32)
    b_ih = jax.random.uniform(k3, (4 * hidden_size,),
                              minval=-bound, maxval=bound, dtype=jnp.float32)
    b_hh = jax.random.uniform(k4, (4 * hidden_size,),
                              minval=-bound, maxval=bound, dtype=jnp.float32)

    ref = jax.block_until_ready(lstm_reference(x, w_ih, w_hh, b_ih, b_hh))

    # f32 weights, T chunked into 2 grid steps (exercises the h/c scratch carry).
    out = lstm_forward(x, w_ih, w_hh, b_ih, b_hh, t_chunk=3)
    out = jax.block_until_ready(out)
    assert out.shape == (6, 6, hidden_size)
    assert float(jnp.max(jnp.abs(out - ref))) < 1e-5

    # bf16 weights (v6e/v7x MXU-native path), f32 accumulation + gate math.
    out_bf16 = lstm_forward(x, w_ih, w_hh, b_ih, b_hh, t_chunk=3,
                            param_dtype=jnp.bfloat16)
    out_bf16 = jax.block_until_ready(out_bf16)
    assert float(jnp.max(jnp.abs(out_bf16 - ref))) < 5e-2

    print("KERNEL_OK")
</pallas_src>

<mosaic_0001>
module attributes {stable_mosaic.version = 11 : i64} {
  func.func @lstm_kernel(%arg0: i32, %arg1: memref<24x1xf32, #tpu.memory_space<vmem>>, %arg2: memref<1x128xf32, #tpu.memory_space<vmem>>, %arg3: memref<32x128xf32, #tpu.memory_space<vmem>>, %arg4: memref<1x128xf32, #tpu.memory_space<vmem>>, %arg5: memref<24x32xf32, #tpu.memory_space<vmem>>, %arg6: memref<8x32xf32, #tpu.memory_space<vmem>>, %arg7: memref<8x32xf32, #tpu.memory_space<vmem>>) attributes {dimension_semantics = [#tpu.dimension_semantics<arbitrary>], iteration_bounds = array<i64: 2>, scalar_prefetch = 0 : i64, scratch_operands = 2 : i64, tpu.core_type = #tpu.core_type<tc>, window_params = [{transform_indices = @transform_0, window_bounds = array<i64: 24, 1>}, {pipeline_mode = #tpu.pipeline_mode<synchronous>, transform_indices = @transform_1, window_bounds = array<i64: 1, 128>}, {pipeline_mode = #tpu.pipeline_mode<synchronous>, transform_indices = @transform_2, window_bounds = array<i64: 32, 128>}, {pipeline_mode = #tpu.pipeline_mode<synchronous>, transform_indices = @transform_3, window_bounds = array<i64: 1, 128>}, {transform_indices = @transform_4, window_bounds = array<i64: 24, 32>}]} {
    %c0_i32 = arith.constant 0 : i32
    %0 = arith.cmpi eq, %arg0, %c0_i32 : i32
    %1 = arith.extui %0 : i1 to i32
    %c0_i32_0 = arith.constant 0 : i32
    %2 = arith.cmpi ne, %1, %c0_i32_0 : i32
    scf.if %2 {
      %cst_26 = arith.constant 0.000000e+00 : f32
      %80 = vector.broadcast %cst_26 : f32 to vector<8x32xf32>
      %c0_27 = arith.constant 0 : index
      %c0_28 = arith.constant 0 : index
      %81 = vector.load %arg6[%c0_27, %c0_28] : memref<8x32xf32, #tpu.memory_space<vmem>>, vector<8x32xf32>
      tpu.vector_store %arg6[%c0_27, %c0_28], %80 {strides = array<i32>} : memref<8x32xf32, #tpu.memory_space<vmem>>, vector<8x32xf32>,
      %cst_29 = arith.constant 0.000000e+00 : f32
      %82 = vector.broadcast %cst_29 : f32 to vector<8x32xf32>
      %c0_30 = arith.constant 0 : index
      %c0_31 = arith.constant 0 : index
      %83 = vector.load %arg7[%c0_30, %c0_31] : memref<8x32xf32, #tpu.memory_space<vmem>>, vector<8x32xf32>
      tpu.vector_store %arg7[%c0_30, %c0_31], %82 {strides = array<i32>} : memref<8x32xf32, #tpu.memory_space<vmem>>, vector<8x32xf32>,
    } else {
    }
    %c0 = arith.constant 0 : index
    %c0_1 = arith.constant 0 : index
    %3 = vector.load %arg2[%c0, %c0_1] : memref<1x128xf32, #tpu.memory_space<vmem>>, vector<1x128xf32>
    %c0_2 = arith.constant 0 : index
    %c0_3 = arith.constant 0 : index
    %4 = vector.load %arg3[%c0_2, %c0_3] : memref<32x128xf32, #tpu.memory_space<vmem>>, vector<32x128xf32>
    %c0_4 = arith.constant 0 : index
    %c0_5 = arith.constant 0 : index
    %5 = vector.load %arg4[%c0_4, %c0_5] : memref<1x128xf32, #tpu.memory_space<vmem>>, vector<1x128xf32>
    %c0_6 = arith.constant 0 : index
    %c0_7 = arith.constant 0 : index
    %6 = vector.load %arg1[%c0_6, %c0_7] : memref<24x1xf32, #tpu.memory_space<vmem>>, vector<24x1xf32>
    %cst = arith.constant dense<0.000000e+00> : vector<24x128xf32>
    %7 = tpu.matmul %6, %3, %cst {dimension_numbers = #tpu.dot_dimension_numbers<[1], [0], [0], [1], [0, 0, 1, 1], [], []>} : vector<24x1xf32>, vector<1x128xf32>, vector<24x128xf32> -> vector<24x128xf32>
    %8 = vector.broadcast %5 : vector<1x128xf32> to vector<24x128xf32>
    %9 = arith.addf %7, %8 : vector<24x128xf32>
    %10 = tpu.iota {dimensions = array<i32: 1>} : vector<8x128xi32>
    %c64_i32 = arith.constant 64 : i32
    %11 = vector.broadcast %c64_i32 : i32 to vector<8x128xi32>
    %12 = arith.cmpi sge, %10, %11 : vector<8x128xi32>
    %c96_i32 = arith.constant 96 : i32
    %13 = vector.broadcast %c96_i32 : i32 to vector<8x128xi32>
    %14 = arith.cmpi slt, %10, %13 : vector<8x128xi32>
    %15 = arith.andi %12, %14 : vector<8x128xi1>
    %c0_8 = arith.constant 0 : index
    %c0_9 = arith.constant 0 : index
    %16 = vector.load %arg6[%c0_8, %c0_9] : memref<8x32xf32, #tpu.memory_space<vmem>>, vector<8x32xf32>
    %c0_10 = arith.constant 0 : index
    %c0_11 = arith.constant 0 : index
    %17 = vector.load %arg7[%c0_10, %c0_11] : memref<8x32xf32, #tpu.memory_space<vmem>>, vector<8x32xf32>
    %18 = vector.extract_strided_slice %9 {offsets = [0, 0], sizes = [8, 128], strides = [1, 1]} : vector<24x128xf32> to vector<8x128xf32>
    %cst_12 = arith.constant dense<0.000000e+00> : vector<8x128xf32>
    %19 = tpu.matmul %16, %4, %cst_12 {dimension_numbers = #tpu.dot_dimension_numbers<[1], [0], [0], [1], [0, 0, 1, 1], [], []>} : vector<8x32xf32>, vector<32x128xf32>, vector<8x128xf32> -> vector<8x128xf32>
    %20 = arith.addf %18, %19 : vector<8x128xf32>
    %21 = math.tanh %20 : vector<8x128xf32>
    %22 = arith.negf %20 : vector<8x128xf32>
    %23 = math.exp %22 : vector<8x128xf32>
    %cst_13 = arith.constant 1.000000e+00 : f32
    %24 = vector.broadcast %cst_13 : f32 to vector<8x128xf32>
    %25 = arith.addf %24, %23 : vector<8x128xf32>
    %26 = arith.divf %24, %25 : vector<8x128xf32>
    %27 = arith.select %15, %21, %26 : vector<8x128xi1>, vector<8x128xf32>
    %28 = vector.extract_strided_slice %27 {offsets = [0, 0], sizes = [8, 32], strides = [1, 1]} : vector<8x128xf32> to vector<8x32xf32>
    %29 = vector.extract_strided_slice %27 {offsets = [0, 32], sizes = [8, 32], strides = [1, 1]} : vector<8x128xf32> to vector<8x32xf32>
    %30 = vector.extract_strided_slice %27 {offsets = [0, 64], sizes = [8, 32], strides = [1, 1]} : vector<8x128xf32> to vector<8x32xf32>
    %31 = vector.extract_strided_slice %27 {offsets = [0, 96], sizes = [8, 32], strides = [1, 1]} : vector<8x128xf32> to vector<8x32xf32>
    %32 = arith.mulf %29, %17 : vector<8x32xf32>
    %33 = arith.mulf %28, %30 : vector<8x32xf32>
    %34 = arith.addf %32, %33 : vector<8x32xf32>
    %35 = math.tanh %34 : vector<8x32xf32>
    %36 = arith.mulf %31, %35 : vector<8x32xf32>
    %c0_14 = arith.constant 0 : index
    %c0_15 = arith.constant 0 : index
    %37 = vector.load %arg5[%c0_14, %c0_15] : memref<24x32xf32, #tpu.memory_space<vmem>>, vector<8x32xf32>
    tpu.vector_store %arg5[%c0_14, %c0_15], %36 {strides = array<i32>} : memref<24x32xf32, #tpu.memory_space<vmem>>, vector<8x32xf32>,
    %38 = vector.extract_strided_slice %9 {offsets = [8, 0], sizes = [8, 128], strides = [1, 1]} : vector<24x128xf32> to vector<8x128xf32>
    %cst_16 = arith.constant dense<0.000000e+00> : vector<8x128xf32>
    %39 = tpu.matmul %36, %4, %cst_16 {dimension_numbers = #tpu.dot_dimension_numbers<[1], [0], [0], [1], [0, 0, 1, 1], [], []>} : vector<8x32xf32>, vector<32x128xf32>, vector<8x128xf32> -> vector<8x128xf32>
    %40 = arith.addf %38, %39 : vector<8x128xf32>
    %41 = math.tanh %40 : vector<8x128xf32>
    %42 = arith.negf %40 : vector<8x128xf32>
    %43 = math.exp %42 : vector<8x128xf32>
    %cst_17 = arith.constant 1.000000e+00 : f32
    %44 = vector.broadcast %cst_17 : f32 to vector<8x128xf32>
    %45 = arith.addf %44, %43 : vector<8x128xf32>
    %46 = arith.divf %44, %45 : vector<8x128xf32>
    %47 = arith.select %15, %41, %46 : vector<8x128xi1>, vector<8x128xf32>
    %48 = vector.extract_strided_slice %47 {offsets = [0, 0], sizes = [8, 32], strides = [1, 1]} : vector<8x128xf32> to vector<8x32xf32>
    %49 = vector.extract_strided_slice %47 {offsets = [0, 32], sizes = [8, 32], strides = [1, 1]} : vector<8x128xf32> to vector<8x32xf32>
    %50 = vector.extract_strided_slice %47 {offsets = [0, 64], sizes = [8, 32], strides = [1, 1]} : vector<8x128xf32> to vector<8x32xf32>
    %51 = vector.extract_strided_slice %47 {offsets = [0, 96], sizes = [8, 32], strides = [1, 1]} : vector<8x128xf32> to vector<8x32xf32>
    %52 = arith.mulf %49, %34 : vector<8x32xf32>
    %53 = arith.mulf %48, %50 : vector<8x32xf32>
    %54 = arith.addf %52, %53 : vector<8x32xf32>
    %55 = math.tanh %54 : vector<8x32xf32>
    %56 = arith.mulf %51, %55 : vector<8x32xf32>
    %c8 = arith.constant 8 : index
    %c0_18 = arith.constant 0 : index
    %57 = vector.load %arg5[%c8, %c0_18] : memref<24x32xf32, #tpu.memory_space<vmem>>, vector<8x32xf32>
    tpu.vector_store %arg5[%c8, %c0_18], %56 {strides = array<i32>} : memref<24x32xf32, #tpu.memory_space<vmem>>, vector<8x32xf32>,
    %58 = vector.extract_strided_slice %9 {offsets = [16, 0], sizes = [8, 128], strides = [1, 1]} : vector<24x128xf32> to vector<8x128xf32>
    %cst_19 = arith.constant dense<0.000000e+00> : vector<8x128xf32>
    %59 = tpu.matmul %56, %4, %cst_19 {dimension_numbers = #tpu.dot_dimension_numbers<[1], [0], [0], [1], [0, 0, 1, 1], [], []>} : vector<8x32xf32>, vector<32x128xf32>, vector<8x128xf32> -> vector<8x128xf32>
    %60 = arith.addf %58, %59 : vector<8x128xf32>
    %61 = math.tanh %60 : vector<8x128xf32>
    %62 = arith.negf %60 : vector<8x128xf32>
    %63 = math.exp %62 : vector<8x128xf32>
    %cst_20 = arith.constant 1.000000e+00 : f32
    %64 = vector.broadcast %cst_20 : f32 to vector<8x128xf32>
    %65 = arith.addf %64, %63 : vector<8x128xf32>
    %66 = arith.divf %64, %65 : vector<8x128xf32>
    %67 = arith.select %15, %61, %66 : vector<8x128xi1>, vector<8x128xf32>
    %68 = vector.extract_strided_slice %67 {offsets = [0, 0], sizes = [8, 32], strides = [1, 1]} : vector<8x128xf32> to vector<8x32xf32>
    %69 = vector.extract_strided_slice %67 {offsets = [0, 32], sizes = [8, 32], strides = [1, 1]} : vector<8x128xf32> to vector<8x32xf32>
    %70 = vector.extract_strided_slice %67 {offsets = [0, 64], sizes = [8, 32], strides = [1, 1]} : vector<8x128xf32> to vector<8x32xf32>
    %71 = vector.extract_strided_slice %67 {offsets = [0, 96], sizes = [8, 32], strides = [1, 1]} : vector<8x128xf32> to vector<8x32xf32>
    %72 = arith.mulf %69, %54 : vector<8x32xf32>
    %73 = arith.mulf %68, %70 : vector<8x32xf32>
    %74 = arith.addf %72, %73 : vector<8x32xf32>
    %75 = math.tanh %74 : vector<8x32xf32>
    %76 = arith.mulf %71, %75 : vector<8x32xf32>
    %c16 = arith.constant 16 : index
    %c0_21 = arith.constant 0 : index
    %77 = vector.load %arg5[%c16, %c0_21] : memref<24x32xf32, #tpu.memory_space<vmem>>, vector<8x32xf32>
    tpu.vector_store %arg5[%c16, %c0_21], %76 {strides = array<i32>} : memref<24x32xf32, #tpu.memory_space<vmem>>, vector<8x32xf32>,
    %c0_22 = arith.constant 0 : index
    %c0_23 = arith.constant 0 : index
    %78 = vector.load %arg6[%c0_22, %c0_23] : memref<8x32xf32, #tpu.memory_space<vmem>>, vector<8x32xf32>
    tpu.vector_store %arg6[%c0_22, %c0_23], %76 {strides = array<i32>} : memref<8x32xf32, #tpu.memory_space<vmem>>, vector<8x32xf32>,
    %c0_24 = arith.constant 0 : index
    %c0_25 = arith.constant 0 : index
    %79 = vector.load %arg7[%c0_24, %c0_25] : memref<8x32xf32, #tpu.memory_space<vmem>>, vector<8x32xf32>
    tpu.vector_store %arg7[%c0_24, %c0_25], %74 {strides = array<i32>} : memref<8x32xf32, #tpu.memory_space<vmem>>, vector<8x32xf32>,
    return
  }
  func.func @transform_0(%arg0: i32) -> (i32, i32) {
    %c0_i32 = arith.constant 0 : i32
    %c0_i32_0 = arith.constant 0 : i32
    return %arg0, %c0_i32 : i32, i32
  }
  func.func @transform_1(%arg0: i32) -> (i32, i32) {
    %c0_i32 = arith.constant 0 : i32
    %c0_i32_0 = arith.constant 0 : i32
    %c0_i32_1 = arith.constant 0 : i32
    return %c0_i32, %c0_i32_0 : i32, i32
  }
  func.func @transform_2(%arg0: i32) -> (i32, i32) {
    %c0_i32 = arith.constant 0 : i32
    %c0_i32_0 = arith.constant 0 : i32
    %c0_i32_1 = arith.constant 0 : i32
    return %c0_i32, %c0_i32_0 : i32, i32
  }
  func.func @transform_3(%arg0: i32) -> (i32, i32) {
    %c0_i32 = arith.constant 0 : i32
    %c0_i32_0 = arith.constant 0 : i32
    %c0_i32_1 = arith.constant 0 : i32
    return %c0_i32, %c0_i32_0 : i32, i32
  }
  func.func @transform_4(%arg0: i32) -> (i32, i32) {
    %c0_i32 = arith.constant 0 : i32
    %c0_i32_0 = arith.constant 0 : i32
    return %arg0, %c0_i32 : i32, i32
  }
}

</mosaic_0001>

<bundles_post_ra>
// kernel: tpu_custom_call.1
= control target key start
LH: loop header
LB: loop body
LE: loop exit
PB: predicated region body
PF: predicated region fallthrough
CT: control target
= control target key end

     0   :  { %s862_s15 = smov 0   ;;  %s971_s0 = inlined_call_operand.vmem [shape: f32[48,1], index: 0, kind: input, shape index: {}]   ;;  %s972_s1 = inlined_call_operand.vmem [shape: f32[1,128], index: 1, kind: input, shape index: {}]   ;;  %s973_s2 = inlined_call_operand.vmem [shape: f32[32,128], index: 2, kind: input, shape index: {}]   ;;  %s974_s3 = inlined_call_operand.vmem [shape: f32[1,128], index: 3, kind: input, shape index: {}]   ;;  %s975_s4 = inlined_call_operand.vmem [shape: f32[48,32], index: 4, kind: output, shape index: {}]  }
   0x1 LB: > { %s701_s16 = sadd.s32 4294967295, %s829_s15   ;;  %p705_p0 = scmp.ge.s32.totalorder %s829_s15, 1  ;;  %s829_s15 = sphi %s862_s15, %s14_s15  }
   0x2   : > { %p163_p1 = scmp.lt.s32.totalorder %s829_s15, 3 }
   0x4   : > { %p164_p2 = pnand %p705_p0, %p163_p1 }
   0x5   : > { %s189_s17 = smul.u32 (!%p164_p2), 3, %s701_s16  ;;  %p708_p4 = scmp.ne.s32.totalorder (!%p164_p2), %s701_s16, 0 }
   0x6   : > { %167 = sbr.rel (%p164_p2) target bundleno = 2152 (0x868), region = 36 }
   0x7   : > { %p190_p3 = scmp.lt.s32.totalorder (!%p164_p2), %s189_s17, 5 }
   0xb   : > { %s979_s17 = smov (!%p190_p3, %s189_s17), 5  ;;  %204 = sbr.rel (%p708_p4) target bundleno = 18 (0x12), region = 40 }
   0xc   : > { %s706_s18 = sshll.u32 %s979_s17, 3 }
   0xd   : > { %s873_s21 = scalar_lea.vmem %s971_s0, %s706_s18  ;;  %s878_s24 = scalar_lea.vmem %s975_s4, %s706_s18 }
  0x10   : > { %vm205_vm0 = vcmask 261120   ;;  %v831_v0 = vmov 0.0  }
  0x11   : > { %206 = vst.msk [vmem:[#allocation2] sm:$0xff] %vm205_vm0, %v831_v0  ;;  %207 = vst.msk [vmem:[#allocation3] sm:$0xff] %vm205_vm0, %v831_v0 }
  0x12 PF: > { %v212_v1 = vld [vmem:[%s973_s2 + $0x18] sm:$0xff]  ;;  %v208_v2 = vld [vmem:[%s972_s1] sm:$0x1]  ;;  %vm233_vm1 = vcmask 1040384   ;;  %v832_v3 = vmov 0.0   ;;  %v211_v4 = vld [vmem:[%s973_s2 + $0x10] sm:$0xff]  ;;  %v317_v19 = vlaneseq }
  0x13   : > { %752 = vmatprep.subr.mxu1 %v832_v3  ;;  %741 = vmatprep.subr.mxu0 %v832_v3  ;;  %v214_v5 = vld [vmem:[%s873_s21] sm:$0xff]  ;;  %vm223_vm2 = vcmask 7168   ;;  %vm833_vm3 = vmmov 0   ;;  %v210_v6 = vld [vmem:[%s973_s2 + $0x8] sm:$0xff]  ;;  %vm324_vm4 = vcmask 261120   ;;  %s834_s11 = smov 64  }
  0x14   : > { %753 = vmatpush3.msra.mxu1 %v212_v1  ;;  %742 = vmatpush3.msk.msra.mxu0 %vm233_vm1, %v208_v2  ;;  %v209_v7 = vld [vmem:[%s973_s2] sm:$0xff]  ;;  %v318_v20 = vand.u32 127, %v317_v19  ;;  %s835_s12 = smov 32   ;;  %v215_v32 = vld [vmem:[%s873_s21 + $0x8] sm:$0xff]  ;;  %v216_v33 = vld [vmem:[%s873_s21 + $0x10] sm:$0xff]  ;;  %s836_s13 = smov 96  }
  0x15   : > { %754 = vmatprep.subr.mxu1 %v832_v3  ;;  %743 = vmatprep.mubr.msk.f32.mxu0 %vm833_vm3, %v832_v3  ;;  %v922_v9 = vld [vmem:[%s974_s3] ss:$0 sm:$0xff] }
  0x16   : > { %755 = vmatpush3.msra.mxu1 %v211_v4  ;;  %744 = vmatmul.mubr.msk.f32.vlgmr.msra.gmra.mxu0 %vm223_vm2, %v214_v5  ;;  %vm319_vm5 = vcmp.ge.s32.totalorder %v318_v20, 64  ;;  %vm320_vm6 = vcmp.lt.s32.totalorder %v318_v20, 96 }
  0x17   : > { %756 = vmatprep.subr.mxu1 %v832_v3  ;;  %760 = vmatprep.mubr.msk.f32.mxu1 %vm833_vm3, %v832_v3  ;;  %vm925_vm7 = vmand %vm319_vm5, %vm320_vm6 }
  0x18   : > { %757 = vmatpush3.msra.mxu1 %v210_v6  ;;  %v322_v8 = vld [vmem:[#allocation2] sm:$0xff]  ;;  %763 = vmatprep.subr.mxu0 %v832_v3  ;;  %v323_v25 = vld [vmem:[#allocation3] sm:$0xff] }
  0x19   : > { %758 = vmatprep.subr.mxu1 %v832_v3  ;;  %764 = vmatpush3.msra.mxu0 %v212_v1 }
  0x1a   : > { %759 = vmatpush3.msra.mxu1 %v209_v7  ;;  %746 = vmatprep.mubr.msk.f32.mxu0 %vm833_vm3, %v832_v3 }
  0x1b   : > { %761 = vmatmul.mubr.msk.f32.vlgmr.msra.gmra.mxu1 %vm324_vm4, %v322_v8  ;;  %765 = vmatprep.subr.mxu0 %v832_v3 }
  0x1c   : > { %766 = vmatpush3.msra.mxu0 %v211_v4  ;;  %774 = vmatprep.subr.mxu1 %v832_v3 }
  0x1d   : > { %767 = vmatprep.subr.mxu0 %v832_v3  ;;  %775 = vmatpush3.msra.mxu1 %v212_v1 }
  0x1e   : > { %768 = vmatpush3.msra.mxu0 %v210_v6  ;;  %776 = vmatprep.subr.mxu1 %v832_v3 }
  0x1f   : > { %769 = vmatprep.subr.mxu0 %v832_v3  ;;  %777 = vmatpush3.msra.mxu1 %v211_v4 }
  0x20   : > { %770 = vmatpush3.msra.mxu0 %v209_v7  ;;  %778 = vmatprep.subr.mxu1 %v832_v3 }
  0x21   : > { %779 = vmatpush3.msra.mxu1 %v210_v6  ;;  %782 = vmatprep.mubr.msk.f32.mxu1 %vm833_vm3, %v832_v3 }
  0x22   : > { %780 = vmatprep.subr.mxu1 %v832_v3  ;;  %747 = vmatmul.mubr.msk.f32.gmra.mxu0 %vm223_vm2, %v215_v32 }
  0x23   : > { %781 = vmatpush3.msra.mxu1 %v209_v7  ;;  %749 = vmatprep.mubr.msk.f32.mxu0 %vm833_vm3, %v832_v3 }
  0x26   : > { %750 = vmatmul.mubr.msk.f32.gmra.mxu0 %vm223_vm2, %v216_v33 }
  0x27   : > { %771 = vmatprep.mubr.msk.f32.mxu0 %vm833_vm3, %v832_v3 }
  0xd6   : > { %v303_v10 = vpop.f32.mrf.mxu0 }
  0xd7   : > { %v304_v11 = vadd.f32 %v922_v9, %v303_v10 }
  0xd8   : > { %v745_v12 = vpop.f32.mrf.mxu0 }
  0xdb   : > { %v394_v13 = vpop.f32.mrf.mxu1 }
  0xdc   : > { %v398_v14 = vadd.f32 %v394_v13, %v304_v11 }
  0xdd   : > { %v762_v15 = vpop.f32.mrf.mxu1 }
  0xde   : > { %v715_v16 = vmul.f32 -1.442695, %v398_v14 }
  0xe0   : > { %799 = vpow2.f32 %v715_v16 }
  0xe1   : > { %801 = vtanh.f32 %v398_v14 }
  0xe2   : > { %v308_v37 = vpop.f32.mrf.mxu0 }
  0xe3   : > { %v309_v42 = vadd.f32 %v922_v9, %v308_v37 }
  0xe4   : > { %v748_v38 = vpop.f32.mrf.mxu0 }
  0xe6   : > { %v313_v39 = vpop.f32.mrf.mxu0 }
  0xe7   : > { %v314_v61 = vadd.f32 %v922_v9, %v313_v39 }
  0xe8   : > { %v751_v40 = vpop.f32.mrf.mxu0 }
  0xed   : > { %v800_v17 = vpop.eup %799 }
  0xee   : > { %v403_v18 = vadd.f32 1.0, %v800_v17  ;;  %v802_v22 = vpop.eup %801 }
  0xf0   : > { %803 = vrcp.f32 %v403_v18 }
  0xfd   : > { %v804_v23 = vpop.eup %803 }
  0xfe   : > { %v406_v24 = vsel %vm925_vm7, %v802_v22, %v804_v23 }
  0xff   : > { %413 = vrot.lane.b32.xlu0 %v406_v24, %s834_s11 }
 0x103   : > { %408 = vrot.lane.b32.xlu0 %v323_v25, %s835_s12 }
 0x171   : > { %v414_v26 = vpop.permute.xlu0 %413 }
 0x172   : > { %v416_v27 = vmul.f32 %v414_v26, %v406_v24 }
 0x174   : > { %418 = vrot.lane.b32.xlu1 %v416_v27, %s835_s12 }
 0x175   : > { %v409_v28 = vpop.permute.xlu0 %408 }
 0x176   : > { %v411_v29 = vmul.f32 %v409_v28, %v406_v24 }
 0x1e6   : > { %v419_v30 = vpop.permute.xlu1 %418 }
 0x1e7   : > { %v421_v31 = vadd.f32 %v419_v30, %v411_v29 }
 0x1e9   : > { %805 = vtanh.f32 %v421_v31 }
 0x1f6   : > { %v806_v34 = vpop.eup %805 }
 0x1f7   : > { %424 = vrot.lane.b32.xlu1 %v806_v34, %s834_s11 }
 0x269   : > { %v425_v35 = vpop.permute.xlu1 %424 }
 0x26a   : > { %v427_v36 = vmul.f32 %v425_v35, %v406_v24 }
 0x26c   : > { %429 = vrot.lane.b32.xlu0 %v427_v36, %s835_s12 }
 0x2de   : > { %v430_v41 = vpop.permute.xlu0 %429 }
 0x2df   : > { %432 = vst.msk [vmem:[%s878_s24] sm:$0xff] %vm324_vm4, %v430_v41  ;;  %772 = vmatmul.mubr.msk.f32.vlgmr.msra.gmra.mxu0 %vm324_vm4, %v430_v41 }
 0x39f   : > { %v501_v43 = vpop.f32.mrf.mxu0 }
 0x3a0   : > { %v505_v44 = vadd.f32 %v501_v43, %v309_v42 }
 0x3a1   : > { %v773_v45 = vpop.f32.mrf.mxu0 }
 0x3a2   : > { %v717_v46 = vmul.f32 -1.442695, %v505_v44 }
 0x3a4   : > { %807 = vpow2.f32 %v717_v46 }
 0x3a5   : > { %809 = vtanh.f32 %v505_v44 }
 0x3b1   : > { %v808_v47 = vpop.eup %807 }
 0x3b2   : > { %v510_v48 = vadd.f32 1.0, %v808_v47  ;;  %v810_v49 = vpop.eup %809 }
 0x3b4   : > { %811 = vrcp.f32 %v510_v48 }
 0x3c1   : > { %v812_v50 = vpop.eup %811 }
 0x3c2   : > { %v513_v51 = vsel %vm925_vm7, %v810_v49, %v812_v50 }
 0x3c3   : > { %516 = vrot.lane.b32.xlu1 %v513_v51, %s834_s11  ;;  %v514_v54 = vmul.f32 %v513_v51, %v421_v31 }
 0x435   : > { %v517_v52 = vpop.permute.xlu1 %516 }
 0x436   : > { %v519_v53 = vmul.f32 %v517_v52, %v513_v51 }
 0x438   : > { %521 = vrot.lane.b32.xlu0 %v519_v53, %s835_s12 }
 0x4aa   : > { %v522_v55 = vpop.permute.xlu0 %521 }
 0x4ab   : > { %v524_v56 = vadd.f32 %v522_v55, %v514_v54 }
 0x4ad   : > { %813 = vtanh.f32 %v524_v56 }
 0x4ba   : > { %v814_v57 = vpop.eup %813 }
 0x4bb   : > { %527 = vrot.lane.b32.xlu1 %v814_v57, %s834_s11 }
 0x52d   : > { %v528_v58 = vpop.permute.xlu1 %527 }
 0x52e   : > { %v530_v59 = vmul.f32 %v528_v58, %v513_v51 }
 0x530   : > { %532 = vrot.lane.b32.xlu0 %v530_v59, %s835_s12 }
 0x5a2   : > { %v533_v60 = vpop.permute.xlu0 %532 }
 0x5a3   : > { %535 = vst.msk [vmem:[%s878_s24 + $0x8] sm:$0xff] %vm324_vm4, %v533_v60  ;;  %783 = vmatmul.mubr.msk.f32.vlgmr.msra.gmra.mxu1 %vm324_vm4, %v533_v60 }
 0x663   : > { %v604_v62 = vpop.f32.mrf.mxu1 }
 0x664   : > { %v608_v63 = vadd.f32 %v604_v62, %v314_v61 }
 0x665   : > { %v784_v0 = vpop.f32.mrf.mxu1 }
 0x666   : > { %v719_v1 = vmul.f32 -1.442695, %v608_v63 }
 0x668   : > { %815 = vpow2.f32 %v719_v1 }
 0x669   : > { %817 = vtanh.f32 %v608_v63 }
 0x675   : > { %v816_v2 = vpop.eup %815 }
 0x676   : > { %v613_v3 = vadd.f32 1.0, %v816_v2  ;;  %v818_v4 = vpop.eup %817 }
 0x678   : > { %819 = vrcp.f32 %v613_v3 }
 0x685   : > { %v820_v5 = vpop.eup %819 }
 0x686   : > { %v616_v6 = vsel %vm925_vm7, %v818_v4, %v820_v5 }
 0x687   : > { %619 = vrot.lane.b32.xlu1 %v616_v6, %s834_s11  ;;  %v617_v9 = vmul.f32 %v616_v6, %v524_v56 }
 0x6f9   : > { %v620_v7 = vpop.permute.xlu1 %619 }
 0x6fa   : > { %v622_v8 = vmul.f32 %v620_v7, %v616_v6 }
 0x6fc   : > { %624 = vrot.lane.b32.xlu0 %v622_v8, %s835_s12 }
 0x76e   : > { %v625_v10 = vpop.permute.xlu0 %624 }
 0x76f   : > { %v627_v11 = vadd.f32 %v625_v10, %v617_v9 }
 0x771   : > { %821 = vtanh.f32 %v627_v11 }
 0x77e   : > { %v822_v12 = vpop.eup %821 }
 0x77f   : > { %630 = vrot.lane.b32.xlu1 %v822_v12, %s834_s11 }
 0x783   : > { %641 = vrot.lane.b32.xlu1 %v627_v11, %s836_s13 }
 0x7f1   : > { %v631_v13 = vpop.permute.xlu1 %630 }
 0x7f2   : > { %v633_v14 = vmul.f32 %v631_v13, %v616_v6 }
 0x7f4   : > { %635 = vrot.lane.b32.xlu0 %v633_v14, %s835_s12 }
 0x7f5   : > { %v642_v15 = vpop.permute.xlu1 %641 }
 0x7f6   : > { %644 = vst.msk [vmem:[#allocation3] sm:$0xff] %vm324_vm4, %v642_v15 }
 0x866   : > { %v636_v16 = vpop.permute.xlu0 %635 }
 0x867   : > { %638 = vst.msk [vmem:[%s878_s24 + $0x10] sm:$0xff] %vm324_vm4, %v636_v16  ;;  %639 = vst.msk [vmem:[#allocation2] sm:$0xff] %vm324_vm4, %v636_v16 }
 0x868 PF: > { %s14_s15 = sadd.s32 1, %s829_s15  }
 0x869   : > { %p11_p5 = scmp.ge.s32.totalorder %s14_s15, 4  }
 0x86b   :  { %13 = sbr.rel (!%p11_p5) target bundleno = 1 (0x1), region = 70 }

</bundles_post_ra>
